<compile_context>
chip_gen: v5e
topology: v5e:2x2
jax: 0.10.0
libtpu: 0.0.40
codegen_flags: <defaults>
</compile_context>

<pallas_src>
import jax
import jax.numpy as jnp
from jax.experimental import pallas as pl
from jax.experimental.pallas import tpu as pltpu


def attention_pooling_kernel(tokens_ref, mask_ref, w1_ref, b1_ref, w2_ref, o_ref):
    # tokens_ref: (Bblk, T, F), mask_ref: (Bblk, T), w1_ref: (F, Upad),
    # b1_ref: (1, Upad), w2_ref: (Upad, C), o_ref: (Bblk, C, F)
    bblk, t, f = tokens_ref.shape
    c = w2_ref.shape[1]

    tokens = tokens_ref[...]                                 # (Bblk, T, F)
    mask = mask_ref[...]                                     # (Bblk, T)  sublane-dense

    # linear1 + tanh, batch-folded: one MXU matmul for the whole block.
    tok2d = tokens.reshape(bblk * t, f)                      # (Bblk*T, F)
    a = jnp.dot(tok2d, w1_ref[...], preferred_element_type=jnp.float32)
    a = jnp.tanh(a + b1_ref[...])                            # (Bblk*T, Upad)  <- EUP roofline

    # linear2 (no bias), batch-folded, then one tiny (T,C)->(C,T) swap per sequence.
    logits = jnp.dot(a, w2_ref[...], preferred_element_type=jnp.float32)  # (Bblk*T, C)
    logits = jnp.swapaxes(logits.reshape(bblk, t, c), 1, 2)               # (Bblk, C, T)
    # TODO(synk): if a bundle dump shows EUP/XLU saturation at large B, produce logits
    # lane-dense as (C, Bblk*T) via a pre-transposed w2 and a segmented-lane T-reduction
    # (review item 6); kept in the proven (Bblk, C, T) layout here for lowering safety.

    m3 = mask[:, None, :]                                    # (Bblk, 1, T), bcast over C

    # Masked softmax over tokens (last dim), merged normalization:
    #   softmax(x*m)*m / (sum(softmax(x*m)*m)+eps)  ==  e*m / (sum(e*m)+eps'),
    #   with e = exp(x*m - max(x*m)); the eps placement differs by O(1e-12) only.
    masked = logits * m3
    masked = masked - jnp.max(masked, axis=-1, keepdims=True)             # stability
    em = jnp.exp(masked) * m3
    p = em * pl.reciprocal(jnp.sum(em, axis=-1, keepdims=True) + 1e-13, approx=False)

    # s = bmm(p, tokens): (Bblk, C, T) @ (Bblk, T, F) -> (Bblk, C, F)
    s = jnp.einsum("bct,btf->bcf", p, tokens, preferred_element_type=jnp.float32)
    # TODO(synk): lane-dense (Bblk, C*F) output slab skipped — C=5 is not sublane
    # aligned so it would force an in-kernel relayout; the wrapper reshape is free.
    o_ref[...] = s.astype(o_ref.dtype)


def _choose_block_batch(B, cap=512, align=32):
    """Sequences per grid step.

    - >= 2 grid steps when the batch allows it, so BlockSpec double-buffering
      overlaps the tokens/mask/output DMA with compute (and on v7x the
      'parallel' axis shards across both TensorCores).
    - multiple of `align`=32 seqs when possible: block_batch*T = 256 LHS rows
      fills the v6e/v7x MXU tile height; also keeps the mask block 8-aligned.
    - capped at `cap` seqs (~30-40 KiB live VMEM per sequence) so one step
      stays well under the 16/32/32 MiB default scoped VMEM on v5e/v6e/v7x.
    """
    if B < 2 * align:
        return B                              # tiny batch: one fat step
    upper = min(cap, B // 2)                  # aim for at least two grid steps
    cand = (upper // align) * align
    while cand >= align:
        if B % cand == 0:
            return cand
        cand -= align
    cand = (upper // 8) * 8                   # fallback: any 8-aligned divisor
    while cand >= 8:
        if B % cand == 0:
            return cand
        cand -= 8
    return B                                  # awkward batch (e.g. prime): single step


def _vmem_limit_bytes(block_batch, T, F, U_pad, C):
    """Conservative per-step VMEM footprint (x2 buffers on BlockSpec tiles),
    with 2x headroom, clamped to [32 MiB, 64 MiB] (v7x physical floor)."""
    lane, sub = 128, 8
    f_pad = -(-F // lane) * lane
    tok_tile = block_batch * T * f_pad * 4
    mask_tile = -(-block_batch // sub) * sub * lane * 4
    out_tile = block_batch * -(-C // sub) * sub * f_pad * 4
    weights = (F * U_pad + U_pad + U_pad * C) * 4
    act = block_batch * T * U_pad * 4                         # f32 (Bblk*T, Upad)
    interm = 4 * block_batch * -(-T // sub) * sub * lane * 4  # logits/masked/em/p tiles
    est = 2 * (tok_tile + mask_tile + out_tile + weights) + act + interm
    return int(min(max(2 * est, 32 << 20), 64 << 20))


def attention_pooling(tokens, mask, w1, b1, w2, *, block_batch=None):
    """tokens: (B, T, F) f32, mask: (B, T) f32/bool. Returns (B, C*F)."""
    B, T, F = tokens.shape
    U = w1.shape[1]
    C = w2.shape[1]

    # Pad hidden dim U up to a multiple of 128 lanes (200 -> 256). Padded columns
    # yield tanh(0 + 0) = 0 and hit zero rows of w2, so results are unchanged.
    U_pad = ((U + 127) // 128) * 128
    if U_pad != U:
        w1 = jnp.pad(w1, ((0, 0), (0, U_pad - U)))
        b1 = jnp.pad(jnp.reshape(b1, (-1,)), (0, U_pad - U))
        w2 = jnp.pad(w2, ((0, U_pad - U), (0, 0)))
    b1_2d = jnp.reshape(b1, (1, U_pad))

    mask2d = mask.astype(jnp.float32)           # (B, T), sublane-dense block

    if block_batch is None:
        block_batch = _choose_block_batch(B)
    # Blocks must evenly divide B; a partial block must be 8-sublane aligned for the
    # 2-D mask BlockSpec, otherwise fall back to a single fat block.
    if B % block_batch != 0 or (block_batch != B and block_batch % 8 != 0):
        block_batch = B
    num_blocks = B // block_batch

    cost = pl.CostEstimate(
        flops=2 * B * T * F * U_pad + 2 * B * T * U_pad * C + 2 * B * C * T * F,
        transcendentals=B * T * U_pad + B * C * T,            # tanh + exp
        bytes_accessed=4 * (B * T * F + B * T + F * U_pad + U_pad + U_pad * C + B * C * F),
    )

    out = pl.pallas_call(
        attention_pooling_kernel,
        out_shape=jax.ShapeDtypeStruct((B, C, F), jnp.float32),
        grid_spec=pltpu.PrefetchScalarGridSpec(
            num_scalar_prefetch=0,
            grid=(num_blocks,),
            in_specs=[
                pl.BlockSpec((block_batch, T, F), lambda i: (i, 0, 0)),  # tokens
                pl.BlockSpec((block_batch, T), lambda i: (i, 0)),        # mask (2-D, dense)
                pl.BlockSpec((F, U_pad), lambda i: (0, 0)),              # w1 (VMEM-resident)
                pl.BlockSpec((1, U_pad), lambda i: (0, 0)),              # b1
                pl.BlockSpec((U_pad, C), lambda i: (0, 0)),              # w2
            ],
            out_specs=pl.BlockSpec((block_batch, C, F), lambda i: (i, 0, 0)),
        ),
        compiler_params=pltpu.CompilerParams(
            dimension_semantics=("parallel",),
            vmem_limit_bytes=_vmem_limit_bytes(block_batch, T, F, U_pad, C),
        ),
        cost_estimate=cost,
    )(tokens, mask2d, w1, b1_2d, w2)

    return out.reshape(B, C * F)   # == torch .view(B, -1); metadata-only on HBM


def _reference(tokens, mask, w1, b1, w2):
    """Pure-JAX reference with the original two-step masked_softmax semantics."""
    a = jnp.tanh(jnp.einsum("btf,fu->btu", tokens, w1) + b1)
    lg = jnp.einsum("btu,uc->btc", a, w2).transpose(0, 2, 1)   # (B, C, T)
    m3 = mask[:, None, :]
    sm = jax.nn.softmax(lg * m3, axis=-1) * m3
    sm = sm / (sm.sum(-1, keepdims=True) + 1e-13)
    return jnp.einsum("bct,btf->bcf", sm, tokens).reshape(tokens.shape[0], -1)


if __name__ == "__main__":
    # Shapes consistent with the module: B=2, T=8 tokens, F=32 features,
    # U=200 (dimension_context_vector_u default), C=5 (number_context_vectors default).
    B, T, F = 2, 8, 32
    U, C = 200, 5

    key = jax.random.PRNGKey(0)
    k_tok, k_w1, k_b1, k_w2 = jax.random.split(key, 4)

    tokens = jax.random.normal(k_tok, (B, T, F), dtype=jnp.float32)

    # Deterministic PyTorch-style uniform(-1/sqrt(fan_in), 1/sqrt(fan_in)) init.
    bound1 = 1.0 / (F ** 0.5)
    w1 = jax.random.uniform(k_w1, (F, U), jnp.float32, -bound1, bound1)
    b1 = jax.random.uniform(k_b1, (U,), jnp.float32, -bound1, bound1)
    bound2 = 1.0 / (U ** 0.5)
    w2 = jax.random.uniform(k_w2, (U, C), jnp.float32, -bound2, bound2)

    # Binary mask with some padded (zero) tokens at the end of each sequence.
    lengths = jnp.array([6, 8], dtype=jnp.int32)
    mask = (jnp.arange(T)[None, :] < lengths[:, None]).astype(jnp.float32)  # (B, T)

    out = attention_pooling(tokens, mask, w1, b1, w2)
    jax.block_until_ready(out)

    s_ref = _reference(tokens, mask, w1, b1, w2)
    assert out.shape == (B, C * F)
    assert jnp.allclose(out, s_ref, atol=1e-5, rtol=1e-5)

    # Also exercise the tiled (grid > 1, 'parallel') path with a modest batch.
    B2 = 128
    k2 = jax.random.PRNGKey(1)
    kt2, kl2 = jax.random.split(k2)
    tokens2 = jax.random.normal(kt2, (B2, T, F), dtype=jnp.float32)
    lengths2 = jax.random.randint(kl2, (B2,), 1, T + 1)
    mask2 = (jnp.arange(T)[None, :] < lengths2[:, None]).astype(jnp.float32)

    out2 = attention_pooling(tokens2, mask2, w1, b1, w2)
    jax.block_until_ready(out2)
    ref2 = _reference(tokens2, mask2, w1, b1, w2)
    assert out2.shape == (B2, C * F)
    assert jnp.allclose(out2, ref2, atol=1e-5, rtol=1e-5)

    print("KERNEL_OK")
</pallas_src>

<mosaic_0001>
module attributes {stable_mosaic.version = 11 : i64} {
  func.func @attention_pooling_kernel(%arg0: i32, %arg1: memref<2x8x32xf32, #tpu.memory_space<vmem>>, %arg2: memref<2x8xf32, #tpu.memory_space<vmem>>, %arg3: memref<32x256xf32, #tpu.memory_space<vmem>>, %arg4: memref<1x256xf32, #tpu.memory_space<vmem>>, %arg5: memref<256x5xf32, #tpu.memory_space<vmem>>, %arg6: memref<2x5x32xf32, #tpu.memory_space<vmem>>) attributes {dimension_semantics = [#tpu.dimension_semantics<parallel>], iteration_bounds = array<i64: 1>, scalar_prefetch = 0 : i64, scratch_operands = 0 : i64, tpu.core_type = #tpu.core_type<tc>, window_params = [{transform_indices = @transform_0, window_bounds = array<i64: 2, 8, 32>}, {transform_indices = @transform_1, window_bounds = array<i64: 2, 8>}, {pipeline_mode = #tpu.pipeline_mode<synchronous>, transform_indices = @transform_2, window_bounds = array<i64: 32, 256>}, {pipeline_mode = #tpu.pipeline_mode<synchronous>, transform_indices = @transform_3, window_bounds = array<i64: 1, 256>}, {pipeline_mode = #tpu.pipeline_mode<synchronous>, transform_indices = @transform_4, window_bounds = array<i64: 256, 5>}, {transform_indices = @transform_5, window_bounds = array<i64: 2, 5, 32>}]} {
    %c0 = arith.constant 0 : index
    %c0_0 = arith.constant 0 : index
    %c0_1 = arith.constant 0 : index
    %0 = vector.load %arg1[%c0, %c0_0, %c0_1] : memref<2x8x32xf32, #tpu.memory_space<vmem>>, vector<2x8x32xf32>
    %c0_2 = arith.constant 0 : index
    %c0_3 = arith.constant 0 : index
    %1 = vector.load %arg2[%c0_2, %c0_3] : memref<2x8xf32, #tpu.memory_space<vmem>>, vector<2x8xf32>
    %2 = vector.shape_cast %0 : vector<2x8x32xf32> to vector<16x32xf32>
    %c0_4 = arith.constant 0 : index
    %c0_5 = arith.constant 0 : index
    %3 = vector.load %arg3[%c0_4, %c0_5] : memref<32x256xf32, #tpu.memory_space<vmem>>, vector<32x256xf32>
    %cst = arith.constant dense<0.000000e+00> : vector<16x256xf32>
    %4 = tpu.matmul %2, %3, %cst {dimension_numbers = #tpu.dot_dimension_numbers<[1], [0], [0], [1], [0, 0, 1, 1], [], []>} : vector<16x32xf32>, vector<32x256xf32>, vector<16x256xf32> -> vector<16x256xf32>
    %c0_6 = arith.constant 0 : index
    %c0_7 = arith.constant 0 : index
    %5 = vector.load %arg4[%c0_6, %c0_7] : memref<1x256xf32, #tpu.memory_space<vmem>>, vector<1x256xf32>
    %6 = vector.broadcast %5 : vector<1x256xf32> to vector<16x256xf32>
    %7 = arith.addf %4, %6 : vector<16x256xf32>
    %8 = math.tanh %7 : vector<16x256xf32>
    %c0_8 = arith.constant 0 : index
    %c0_9 = arith.constant 0 : index
    %9 = vector.load %arg5[%c0_8, %c0_9] : memref<256x5xf32, #tpu.memory_space<vmem>>, vector<256x5xf32>
    %cst_10 = arith.constant dense<0.000000e+00> : vector<16x5xf32>
    %10 = tpu.matmul %8, %9, %cst_10 {dimension_numbers = #tpu.dot_dimension_numbers<[1], [0], [0], [1], [0, 0, 1, 1], [], []>} : vector<16x256xf32>, vector<256x5xf32>, vector<16x5xf32> -> vector<16x5xf32>
    %11 = vector.shape_cast %10 : vector<16x5xf32> to vector<2x8x5xf32>
    %12 = tpu.transpose %11, [0, 2, 1] : vector<2x8x5xf32> -> vector<2x5x8xf32>
    %13 = vector.shape_cast %1 : vector<2x8xf32> to vector<2x1x8xf32>
    %14 = vector.broadcast %13 : vector<2x1x8xf32> to vector<2x5x8xf32>
    %15 = arith.mulf %12, %14 : vector<2x5x8xf32>
    %cst_11 = arith.constant dense<0xFF800000> : vector<2x5xf32>
    %16 = vector.multi_reduction <maximumf>, %15, %cst_11 [2] : vector<2x5x8xf32> to vector<2x5xf32>
    %17 = vector.shape_cast %16 : vector<2x5xf32> to vector<2x5x1xf32>
    %18 = vector.broadcast %17 : vector<2x5x1xf32> to vector<2x5x8xf32>
    %19 = arith.subf %15, %18 : vector<2x5x8xf32>
    %20 = math.exp %19 : vector<2x5x8xf32>
    %21 = vector.broadcast %13 : vector<2x1x8xf32> to vector<2x5x8xf32>
    %22 = arith.mulf %20, %21 : vector<2x5x8xf32>
    %cst_12 = arith.constant dense<0.000000e+00> : vector<2x5xf32>
    %23 = vector.multi_reduction <add>, %22, %cst_12 [2] : vector<2x5x8xf32> to vector<2x5xf32>
    %24 = vector.shape_cast %23 : vector<2x5xf32> to vector<2x5x1xf32>
    %cst_13 = arith.constant 9.99999982E-14 : f32
    %25 = vector.broadcast %cst_13 : f32 to vector<2x5x1xf32>
    %26 = arith.addf %24, %25 : vector<2x5x1xf32>
    %27 = tpu.reciprocal %26 : vector<2x5x1xf32> -> vector<2x5x1xf32>
    %28 = vector.broadcast %27 : vector<2x5x1xf32> to vector<2x5x8xf32>
    %29 = arith.mulf %22, %28 : vector<2x5x8xf32>
    "tpu.trace_start"() <{level = 10 : i32, message = "bct,btf->bcf"}> : () -> ()
    %cst_14 = arith.constant dense<0.000000e+00> : vector<2x5x32xf32>
    %30 = tpu.matmul %29, %0, %cst_14 {dimension_numbers = #tpu.dot_dimension_numbers<[2], [1], [1], [2], [0, 0, 0, 1, 1, 2], [0], [0]>} : vector<2x5x8xf32>, vector<2x8x32xf32>, vector<2x5x32xf32> -> vector<2x5x32xf32>
    "tpu.trace_stop"() : () -> ()
    %c0_15 = arith.constant 0 : index
    %c0_16 = arith.constant 0 : index
    %c0_17 = arith.constant 0 : index
    %31 = vector.load %arg6[%c0_15, %c0_16, %c0_17] : memref<2x5x32xf32, #tpu.memory_space<vmem>>, vector<2x5x32xf32>
    tpu.vector_store %arg6[%c0_15, %c0_16, %c0_17], %30 {strides = array<i32>} : memref<2x5x32xf32, #tpu.memory_space<vmem>>, vector<2x5x32xf32>,
    return
  }
  func.func @transform_0(%arg0: i32) -> (i32, i32, i32) {
    %c0_i32 = arith.constant 0 : i32
    %c0_i32_0 = arith.constant 0 : i32
    %c0_i32_1 = arith.constant 0 : i32
    return %arg0, %c0_i32, %c0_i32_0 : i32, i32, i32
  }
  func.func @transform_1(%arg0: i32) -> (i32, i32) {
    %c0_i32 = arith.constant 0 : i32
    %c0_i32_0 = arith.constant 0 : i32
    return %arg0, %c0_i32 : i32, i32
  }
  func.func @transform_2(%arg0: i32) -> (i32, i32) {
    %c0_i32 = arith.constant 0 : i32
    %c0_i32_0 = arith.constant 0 : i32
    %c0_i32_1 = arith.constant 0 : i32
    return %c0_i32, %c0_i32_0 : i32, i32
  }
  func.func @transform_3(%arg0: i32) -> (i32, i32) {
    %c0_i32 = arith.constant 0 : i32
    %c0_i32_0 = arith.constant 0 : i32
    %c0_i32_1 = arith.constant 0 : i32
    return %c0_i32, %c0_i32_0 : i32, i32
  }
  func.func @transform_4(%arg0: i32) -> (i32, i32) {
    %c0_i32 = arith.constant 0 : i32
    %c0_i32_0 = arith.constant 0 : i32
    %c0_i32_1 = arith.constant 0 : i32
    return %c0_i32, %c0_i32_0 : i32, i32
  }
  func.func @transform_5(%arg0: i32) -> (i32, i32, i32) {
    %c0_i32 = arith.constant 0 : i32
    %c0_i32_0 = arith.constant 0 : i32
    %c0_i32_1 = arith.constant 0 : i32
    return %arg0, %c0_i32, %c0_i32_0 : i32, i32, i32
  }
}

</mosaic_0001>

<bundles_post_ra>
// kernel: tpu_custom_call.1
= control target key start
LH: loop header
LB: loop body
LE: loop exit
PB: predicated region body
PF: predicated region fallthrough
CT: control target
= control target key end

     0   :  { %vm37_vm0 = vcmask 261120   ;;  %vm244_vm1 = vcmask 61440   ;;  %vm297_vm6 = vcmask 64512   ;;  %vm344_vm11 = vcmask 258048   ;;  %s552_s2 = inlined_call_operand.vmem [shape: f32[32,256], index: 2, kind: input, shape index: {}]   ;;  %s553_s4 = inlined_call_operand.vmem [shape: f32[256,5], index: 4, kind: input, shape index: {}]   ;;  %s554_s0 = inlined_call_operand.vmem [shape: f32[2,8,32], index: 0, kind: input, shape index: {}]   ;;  %s555_s3 = inlined_call_operand.vmem [shape: f32[1,256], index: 3, kind: input, shape index: {}]   ;;  %s556_s1 = inlined_call_operand.vmem [shape: f32[2,8], index: 1, kind: input, shape index: {}]   ;;  %s557_s5 = inlined_call_operand.vmem [shape: f32[2,5,32], index: 5, kind: output, shape index: {}]  }
   0x1   :  { %v29_v0 = vld [vmem:[%s552_s2 + $0x30] sm:$0xff]  ;;  %v30_v1 = vld [vmem:[%s552_s2 + $0x38] sm:$0xff]  ;;  %v27_v2 = vld [vmem:[%s552_s2 + $0x20] sm:$0xff] }
   0x2   :  { %56 = vmatpush.msra.mxu0 %v29_v0  ;;  %79 = vmatpush.msra.mxu1 %v30_v1  ;;  %v28_v3 = vld [vmem:[%s552_s2 + $0x28] sm:$0xff]  ;;  %v25_v4 = vld [vmem:[%s552_s2 + $0x10] sm:$0xff]  ;;  %v26_v5 = vld [vmem:[%s552_s2 + $0x18] sm:$0xff] }
   0x3   :  { %v23_v6 = vld [vmem:[%s552_s2] sm:$0xff]  ;;  %v109_v7 = vld [vmem:[%s553_s4 + $0x78] sm:$0xff]  ;;  %v24_v9 = vld [vmem:[%s552_s2 + $0x8] sm:$0xff] }
   0x4   :  { %57 = vmatpush.msra.mxu0 %v27_v2  ;;  %80 = vmatpush.msra.mxu1 %v28_v3  ;;  %v125_v8 = vld [vmem:[%s553_s4 + $0xf8] sm:$0xff]  ;;  %v108_v10 = vld [vmem:[%s553_s4 + $0x70] sm:$0xff]  ;;  %v20_v12 = vld [vmem:[%s554_s0] sm:$0xff] }
   0x5   :  { %126 = vmatpush.msra.mxu2 %v109_v7  ;;  %149 = vmatpush.msra.mxu3 %v125_v8  ;;  %v124_v11 = vld [vmem:[%s553_s4 + $0xf0] sm:$0xff]  ;;  %v107_v13 = vld [vmem:[%s553_s4 + $0x68] sm:$0xff]  ;;  %v106_v15 = vld [vmem:[%s553_s4 + $0x60] sm:$0xff] }
   0x6   :  { %58 = vmatpush.msra.mxu0 %v25_v4  ;;  %81 = vmatpush.msra.mxu1 %v26_v5  ;;  %v123_v14 = vld [vmem:[%s553_s4 + $0xe8] sm:$0xff]  ;;  %v122_v16 = vld [vmem:[%s553_s4 + $0xe0] sm:$0xff]  ;;  %v105_v18 = vld [vmem:[%s553_s4 + $0x58] sm:$0xff] }
   0x7   :  { %127 = vmatpush.msra.mxu2 %v108_v10  ;;  %150 = vmatpush.msra.mxu3 %v124_v11  ;;  %v21_v17 = vld [vmem:[%s554_s0 + $0x8] sm:$0xff]  ;;  %v121_v19 = vld [vmem:[%s553_s4 + $0xd8] sm:$0xff]  ;;  %v104_v20 = vld [vmem:[%s553_s4 + $0x50] sm:$0xff] }
   0x8   :  { %59 = vmatpush.msra.mxu0 %v23_v6  ;;  %82 = vmatpush.msra.mxu1 %v24_v9  ;;  %v120_v21 = vld [vmem:[%s553_s4 + $0xd0] sm:$0xff]  ;;  %v103_v22 = vld [vmem:[%s553_s4 + $0x48] sm:$0xff]  ;;  %v102_v24 = vld [vmem:[%s553_s4 + $0x40] sm:$0xff] }
   0x9   :  { %351 = vmatmul.msk.f32.vlgmr.msra.gmra.mxu0 %vm37_vm0, %v20_v12  ;;  %353 = vmatmul.msk.f32.vlgmr.msra.gmra.mxu1 %vm37_vm0, %v20_v12  ;;  %v119_v23 = vld [vmem:[%s553_s4 + $0xc8] sm:$0xff]  ;;  %v118_v25 = vld [vmem:[%s553_s4 + $0xc0] sm:$0xff]  ;;  %v101_v26 = vld [vmem:[%s553_s4 + $0x38] sm:$0xff] }
   0xa   :  { %128 = vmatpush.msra.mxu2 %v107_v13  ;;  %151 = vmatpush.msra.mxu3 %v123_v14  ;;  %v117_v27 = vld [vmem:[%s553_s4 + $0xb8] sm:$0xff]  ;;  %v100_v28 = vld [vmem:[%s553_s4 + $0x30] sm:$0xff]  ;;  %v99_v30 = vld [vmem:[%s553_s4 + $0x28] sm:$0xff] }
   0xb   :  { %316 = vmatpush.msrb.mxu0 %v20_v12  ;;  %339 = vmatpush.msrb.mxu1 %v21_v17  ;;  %v116_v29 = vld [vmem:[%s553_s4 + $0xb0] sm:$0xff]  ;;  %v115_v31 = vld [vmem:[%s553_s4 + $0xa8] sm:$0xff]  ;;  %v98_v32 = vld [vmem:[%s553_s4 + $0x20] sm:$0xff] }
   0xc   :  { %129 = vmatpush.msra.mxu2 %v106_v15  ;;  %152 = vmatpush.msra.mxu3 %v122_v16  ;;  %v114_v33 = vld [vmem:[%s553_s4 + $0xa0] sm:$0xff]  ;;  %v97_v34 = vld [vmem:[%s553_s4 + $0x18] sm:$0xff]  ;;  %v96_v36 = vld [vmem:[%s553_s4 + $0x10] sm:$0xff] }
   0xd   :  { %v113_v35 = vld [vmem:[%s553_s4 + $0x98] sm:$0xff]  ;;  %v112_v37 = vld [vmem:[%s553_s4 + $0x90] sm:$0xff]  ;;  %v95_v38 = vld [vmem:[%s553_s4 + $0x8] sm:$0xff] }
   0xe   :  { %130 = vmatpush.msra.mxu2 %v105_v18  ;;  %153 = vmatpush.msra.mxu3 %v121_v19  ;;  %v111_v39 = vld [vmem:[%s553_s4 + $0x88] sm:$0xff]  ;;  %v94_v40 = vld [vmem:[%s553_s4] sm:$0xff] }
   0xf   :  { %v110_v41 = vld [vmem:[%s553_s4 + $0x80] sm:$0xff] }
  0x10   :  { %131 = vmatpush.msra.mxu2 %v104_v20  ;;  %154 = vmatpush.msra.mxu3 %v120_v21  ;;  %v31_v42 = vld [vmem:[%s555_s3] sm:$0x3] }
  0x11   :  { %352 = vmatmul.msk.f32.gmra.mxu0 %vm37_vm0, %v21_v17  ;;  %354 = vmatmul.msk.f32.gmra.mxu1 %vm37_vm0, %v21_v17  ;;  %v33_v43 = vperm.slane %v31_v42, 0  ;;  %v34_v44 = vperm.slane %v31_v42, 1  ;;  %v22_v63 = vld [vmem:[%s556_s1] sm:$0x3] }
  0x12   :  { %132 = vmatpush.msra.mxu2 %v103_v22  ;;  %155 = vmatpush.msra.mxu3 %v119_v23  ;;  %v238_v0 = vperm.slane %v22_v63, 0  ;;  %v237_v3 = vrot.slane %v22_v63, 1 }
  0x14   :  { %133 = vmatpush.msra.mxu2 %v102_v24  ;;  %156 = vmatpush.msra.mxu3 %v118_v25  ;;  %v239_v5 = vperm.slane %v237_v3, 0 }
  0x16   :  { %134 = vmatpush.msra.mxu2 %v101_v26  ;;  %157 = vmatpush.msra.mxu3 %v117_v27 }
  0x18   :  { %135 = vmatpush.msra.mxu2 %v100_v28  ;;  %158 = vmatpush.msra.mxu3 %v116_v29 }
  0x1a   :  { %136 = vmatpush.msra.mxu2 %v99_v30  ;;  %159 = vmatpush.msra.mxu3 %v115_v31 }
  0x1c   :  { %137 = vmatpush.msra.mxu2 %v98_v32  ;;  %160 = vmatpush.msra.mxu3 %v114_v33 }
  0x1e   :  { %138 = vmatpush.msra.mxu2 %v97_v34  ;;  %161 = vmatpush.msra.mxu3 %v113_v35 }
  0x20   :  { %139 = vmatpush.msra.mxu2 %v96_v36  ;;  %162 = vmatpush.msra.mxu3 %v112_v37 }
  0x22   :  { %140 = vmatpush.msra.mxu2 %v95_v38  ;;  %163 = vmatpush.msra.mxu3 %v111_v39 }
  0x24   :  { %141 = vmatpush.msra.mxu2 %v94_v40  ;;  %164 = vmatpush.msra.mxu3 %v110_v41 }
  0x86   :  { %v61_v45 = vpop.f32.mrf.mxu0  ;;  %v84_v46 = vpop.f32.mrf.mxu1 }
  0x87   :  { %v62_v47 = vadd.f32 %v61_v45, %v33_v43  ;;  %v85_v48 = vadd.f32 %v84_v46, %v34_v44 }
  0x89   :  { %358 = vtanh.f32 %v62_v47 }
  0x8a   :  { %360 = vtanh.f32 %v85_v48 }
  0x8e   :  { %v64_v49 = vpop.f32.mrf.mxu0  ;;  %v87_v50 = vpop.f32.mrf.mxu1 }
  0x8f   :  { %v359_v51 = vpop.eup %358  ;;  %v65_v52 = vadd.f32 %v64_v49, %v33_v43  ;;  %v88_v53 = vadd.f32 %v87_v50, %v34_v44 }
  0x90   :  { %v361_v54 = vpop.eup %360  ;;  %142 = vmatmul.f32.vlgmr.msra.gmra.mxu2 %v359_v51 }
  0x91   :  { %362 = vtanh.f32 %v65_v52  ;;  %165 = vmatmul.f32.vlgmr.msra.gmra.mxu3 %v361_v54 }
  0x92   :  { %364 = vtanh.f32 %v88_v53 }
  0x97   :  { %v363_v55 = vpop.eup %362 }
  0x98   :  { %v365_v56 = vpop.eup %364  ;;  %145 = vmatmul.f32.gmra.mxu2 %v363_v55 }
  0x99   :  { %168 = vmatmul.f32.gmra.mxu3 %v365_v56 }
 0x113   :  { %v143_v57 = vpop.f32.mrf.mxu2 }
 0x114   :  { %v166_v58 = vpop.f32.mrf.mxu3 }
 0x115   :  { %v167_v59 = vadd.f32 %v166_v58, %v143_v57 }
 0x117   :  { %172 = vxpose.xlu0.b32.start.end [1/1] (short) (narrow) %v167_v59, 8 }
 0x11b   :  { %v146_v60 = vpop.f32.mrf.mxu2 }
 0x11c   :  { %v169_v61 = vpop.f32.mrf.mxu3 }
 0x11d   :  { %v170_v62 = vadd.f32 %v169_v61, %v146_v60 }
 0x11f   :  { %204 = vxpose.xlu0.b32.start.end [1/1] (short) (narrow) %v170_v62, 8 }
 0x1bb   :  { %v188_v1 = vpop.trf.xlu0 }
 0x1bc   :  { %v242_v2 = vmul.f32 %v238_v0, %v188_v1 }
 0x1be   :  { %v245_v4 = vsel %vm244_vm1, %v242_v2, -inf }
 0x1bf   :  { %246 = vmax.xlane.f32.xlu1 %v245_v4 }
 0x1c3   :  { %v220_v6 = vpop.trf.xlu0 }
 0x1c4   :  { %v243_v7 = vmul.f32 %v239_v5, %v220_v6 }
 0x1c6   :  { %v248_v8 = vsel %vm244_vm1, %v243_v7, -inf }
 0x1c7   :  { %249 = vmax.xlane.f32.xlu1 %v248_v8 }
 0x232   :  { %v247_v9 = vpop.xlane.xlu1 %246 }
 0x233   :  { %v251_v10 = vsub.f32 %v242_v2, %v247_v9 }
 0x235   :  { %v253_v11 = vmul.f32 1.442695, %v251_v10 }
 0x237   :  { %366 = vpow2.f32 %v253_v11 }
 0x23a   :  { %v250_v12 = vpop.xlane.xlu1 %249 }
 0x23b   :  { %v252_v13 = vsub.f32 %v243_v7, %v250_v12 }
 0x23d   :  { %v367_v14 = vpop.eup %366  ;;  %v255_v15 = vmul.f32 1.442695, %v252_v13 }
 0x23e   :  { %v257_v16 = vmul.f32 %v367_v14, %v238_v0 }
 0x23f   :  { %368 = vpow2.f32 %v255_v15 }
 0x240   :  { %v259_v17 = vsel %vm244_vm1, %v257_v16, 0.0 }
 0x241   :  { %260 = vadd.xlane.f32.xlu2 %v259_v17 }
 0x245   :  { %v369_v18 = vpop.eup %368 }
 0x246   :  { %v258_v19 = vmul.f32 %v369_v18, %v239_v5 }
 0x248   :  { %v262_v20 = vsel %vm244_vm1, %v258_v19, 0.0 }
 0x249   :  { %263 = vadd.xlane.f32.xlu2 %v262_v20 }
 0x2b4   :  { %v261_v21 = vpop.xlane.xlu2 %260 }
 0x2b5   :  { %v265_v22 = vadd.f32 1e-13, %v261_v21 }
 0x2b7   :  { %370 = vrcp.f32 %v265_v22  ;;  %v278_v28 = vand.u32 2147483648, %v265_v22  ;;  %v276_v30 = vand.u32 2147483647, %v265_v22  ;;  %vm272_vm3 = vweird.f32 %v265_v22 }
 0x2b9   :  { %v279_v33 = vor.u32 1.1754944e-38, %v278_v28  ;;  %vm277_vm5 = vcmp.eq.f32.partialorder %v276_v30, 8.507059e+37 }
 0x2bc   :  { %v264_v23 = vpop.xlane.xlu2 %263 }
 0x2bd   :  { %v371_v24 = vpop.eup %370  ;;  %v266_v25 = vadd.f32 1e-13, %v264_v23 }
 0x2be   :  { %v268_v26 = vmul.f32 %v371_v24, %v265_v22  ;;  %vm273_vm2 = vweird.f32 %v371_v24 }
 0x2bf   :  { %372 = vrcp.f32 %v266_v25  ;;  %vm274_vm4 = vmor %vm272_vm3, %vm273_vm2  ;;  %v292_v39 = vand.u32 2147483648, %v266_v25  ;;  %v290_v41 = vand.u32 2147483647, %v266_v25  ;;  %vm286_vm8 = vweird.f32 %v266_v25 }
 0x2c0   :  { %v269_v27 = vsub.f32 1.0, %v268_v26 }
 0x2c1   :  { %v293_v43 = vor.u32 1.1754944e-38, %v292_v39  ;;  %vm291_vm10 = vcmp.eq.f32.partialorder %v290_v41, 8.507059e+37 }
 0x2c2   :  { %v270_v29 = vmul.f32 %v371_v24, %v269_v27 }
 0x2c4   :  { %v271_v31 = vadd.f32 %v371_v24, %v270_v29 }
 0x2c5   :  { %v373_v32 = vpop.eup %372 }
 0x2c6   :  { %v282_v34 = vmul.f32 %v373_v32, %v266_v25  ;;  %v275_v35 = vsel %vm274_vm4, %v371_v24, %v271_v31  ;;  %vm287_vm7 = vweird.f32 %v373_v32 }
 0x2c7   :  { %v280_v36 = vsel %vm277_vm5, %v279_v33, %v275_v35  ;;  %vm288_vm9 = vmor %vm286_vm8, %vm287_vm7 }
 0x2c8   :  { %v283_v37 = vsub.f32 1.0, %v282_v34  ;;  %v295_v38 = vmul.f32 %v280_v36, %v257_v16 }
 0x2ca   :  { %v284_v40 = vmul.f32 %v373_v32, %v283_v37  ;;  %355 = vmatmul.msk.f32.vlgmr.msrb.gmra.mxu0 %vm297_vm6, %v295_v38 }
 0x2cc   :  { %v285_v42 = vadd.f32 %v373_v32, %v284_v40 }
 0x2ce   :  { %v289_v44 = vsel %vm288_vm9, %v373_v32, %v285_v42 }
 0x2cf   :  { %v294_v45 = vsel %vm291_vm10, %v293_v43, %v289_v44 }
 0x2d0   :  { %v296_v46 = vmul.f32 %v294_v45, %v258_v19 }
 0x2d2   :  { %356 = vmatmul.msk.f32.vlgmr.msrb.gmra.mxu1 %vm297_vm6, %v296_v46 }
 0x347   :  { %v318_v47 = vpop.f32.mrf.mxu0 }
 0x348   :  { %345 = vst.msk [vmem:[%s557_s5] sm:$0x1f] %vm344_vm11, %v318_v47 }
 0x34f   :  { %v341_v48 = vpop.f32.mrf.mxu1 }
 0x350   :  { %346 = vst.msk [vmem:[%s557_s5 + $0x8] sm:$0x1f] %vm344_vm11, %v341_v48 }

</bundles_post_ra>
